<compile_context>
chip_gen: v7x
topology: tpu7x:2x2x1
jax: 0.10.0
libtpu: 0.0.40
codegen_flags: <defaults>
</compile_context>

<pallas_src>
import jax
import jax.numpy as jnp
from jax.experimental import pallas as pl
from jax.experimental.pallas import tpu as pltpu

IN_DIM = 32 * 32 * 3   # 3072
H1 = 10
H2 = 300
OUT_DIM = 100


def _round_up(n, m):
    return ((n + m - 1) // m) * m


def _nn_cif_kernel(x_ref, w1_ref, b1_ref, w2_ref, b2_ref, w3_ref, b3_ref, o_ref):
    # x_ref: (bt, 3072) bf16 (streamed); weights bf16 (resident); biases f32.
    x = x_ref[...]
    h1 = jnp.dot(x, w1_ref[...], preferred_element_type=jnp.float32) + b1_ref[...]
    h1 = jnp.maximum(h1, 0.0)                                         # (bt, 10)  f32
    h2 = jnp.dot(h1.astype(jnp.bfloat16), w2_ref[...],
                 preferred_element_type=jnp.float32) + b2_ref[...]
    h2 = jnp.maximum(h2, 0.0)                                         # (bt, 300) f32
    o_ref[...] = jnp.dot(h2.astype(jnp.bfloat16), w3_ref[...],
                         preferred_element_type=jnp.float32) + b3_ref[...]  # (bt, 100)


def _vmem_limit_bytes(bt, x_itemsize):
    lane = lambda n: _round_up(n, 128)
    sub = lambda n: _round_up(n, 8)
    x_buf = 2 * bt * IN_DIM * x_itemsize                    # double-buffered streamed x
    out_buf = 2 * bt * lane(OUT_DIM) * 4                    # double-buffered output tile
    # Resident weights still get pipeline double-buffers; account for lane padding.
    w_buf = 2 * 2 * (sub(IN_DIM) * lane(H1) + sub(H1) * lane(H2) + sub(H2) * lane(OUT_DIM))
    b_buf = 2 * 4 * 8 * (lane(H1) + lane(H2) + lane(OUT_DIM))
    # f32 intermediates (h1, h2, pre-store out) + their bf16 casts.
    tmp = bt * (lane(H1) + lane(H2) + lane(OUT_DIM)) * (4 + 2)
    slack = 2 * 1024 * 1024                                  # Mosaic internal scratch
    budget = x_buf + out_buf + w_buf + b_buf + tmp + slack
    return int(min(max(budget, 16 * 1024 * 1024), 64 * 1024 * 1024))


def nn_cif_forward(xb, params, b_tile=1024, stream_dtype=jnp.bfloat16):
    """xb: any shape whose trailing dims multiply to 3072 (e.g. (B,3,32,32) or (B,3072))."""
    x = jnp.reshape(xb, (-1, IN_DIM)).astype(stream_dtype)   # no-op if caller already holds bf16
    B = x.shape[0]
    (w1, b1), (w2, b2), (w3, b3) = params
    w1, w2, w3 = (w.astype(jnp.bfloat16) for w in (w1, w2, w3))
    b1, b2, b3 = (b.astype(jnp.float32) for b in (b1, b2, b3))

    # Batch tile: multiple of 16 (bf16 sublane packing).  For B <= 2*b_tile shrink the
    # tile so there are >= 2 grid steps and both v7x TensorCores get work.
    row_align = 16 if jnp.dtype(stream_dtype).itemsize < 4 else 8
    if B <= 2 * b_tile:
        bt = max(row_align, _round_up(pl.cdiv(B, 2), row_align))
    else:
        bt = _round_up(b_tile, row_align)

    grid = (pl.cdiv(B, bt),)
    Bp = grid[0] * bt   # output rows allocated (no ragged output writes);
                        # x itself is NOT padded -- last block is a ragged read.

    def resident(shape):
        # Whole-array block, constant block index: fetched once, reused every batch tile.
        return pl.BlockSpec(shape, lambda i: (0, 0))

    in_specs = [
        pl.BlockSpec((bt, IN_DIM), lambda i: (i, 0)),   # streamed / pipelined over the batch
        resident(w1.shape), resident(b1.shape),
        resident(w2.shape), resident(b2.shape),
        resident(w3.shape), resident(b3.shape),
    ]
    out_specs = pl.BlockSpec((bt, OUT_DIM), lambda i: (i, 0))

    out = pl.pallas_call(
        _nn_cif_kernel,
        out_shape=jax.ShapeDtypeStruct((Bp, OUT_DIM), jnp.float32),
        grid=grid,
        in_specs=in_specs,
        out_specs=out_specs,
        compiler_params=pltpu.CompilerParams(
            dimension_semantics=("parallel",),   # independent batch tiles (v7x megacore)
            vmem_limit_bytes=_vmem_limit_bytes(bt, jnp.dtype(stream_dtype).itemsize),
        ),
    )(x, w1, b1, w2, b2, w3, b3)
    return out[:B]


def init_params(key):
    """Deterministic init mimicking torch.nn.Linear default: U(-1/sqrt(fan_in), 1/sqrt(fan_in))."""
    dims = [(IN_DIM, H1), (H1, H2), (H2, OUT_DIM)]
    params = []
    for fan_in, fan_out in dims:
        key, kw, kb = jax.random.split(key, 3)
        bound = 1.0 / jnp.sqrt(float(fan_in))
        # Stored as (in, out) so the kernel does x @ W (== torch x @ W_torch.T).
        w = jax.random.uniform(kw, (fan_in, fan_out), jnp.float32, -bound, bound)
        b = jax.random.uniform(kb, (1, fan_out), jnp.float32, -bound, bound)
        params.append((w, b))
    return params


def reference_forward_matched(xb, params):
    """Same arithmetic as the kernel: bf16 operands, f32 accumulation."""
    x = jnp.reshape(xb, (-1, IN_DIM))
    (w1, b1), (w2, b2), (w3, b3) = params

    def lin(a, w, b):
        return jnp.dot(a.astype(jnp.bfloat16), w.astype(jnp.bfloat16),
                       preferred_element_type=jnp.float32) + b.astype(jnp.float32)

    h1 = jax.nn.relu(lin(x, w1, b1))
    h2 = jax.nn.relu(lin(h1, w2, b2))
    return lin(h2, w3, b3)


def reference_forward_f32(xb, params):
    """True f32 reference (torch-like), for a loose sanity check."""
    x = jnp.reshape(xb, (-1, IN_DIM)).astype(jnp.float32)
    (w1, b1), (w2, b2), (w3, b3) = params
    hi = jax.lax.Precision.HIGHEST
    h1 = jax.nn.relu(jnp.dot(x, w1, precision=hi) + b1)
    h2 = jax.nn.relu(jnp.dot(h1, w2, precision=hi) + b2)
    return jnp.dot(h2, w3, precision=hi) + b3


if __name__ == "__main__":
    key = jax.random.PRNGKey(0)
    key, kx = jax.random.split(key)
    # Small CIFAR-like batch: (B=2, C=3, H=32, W=32) -> flattened to (2, 3072) inside forward.
    xb = jax.random.normal(kx, (2, 3, 32, 32), dtype=jnp.float32)

    params = init_params(key)

    out = jax.block_until_ready(nn_cif_forward(xb, params))
    assert out.shape == (2, OUT_DIM)

    # Bit-level check against the same bf16-operand / f32-accumulate arithmetic.
    ref_m = reference_forward_matched(xb, params)
    assert jnp.allclose(out, ref_m, atol=1e-3, rtol=1e-3), float(jnp.max(jnp.abs(out - ref_m)))

    # Loose check against a true-f32 reference (bf16 streaming precision budget).
    ref_f = reference_forward_f32(xb, params)
    assert jnp.allclose(out, ref_f, atol=3e-2, rtol=3e-2), float(jnp.max(jnp.abs(out - ref_f)))

    print("KERNEL_OK")
</pallas_src>

<mosaic_0001>
module attributes {stable_mosaic.version = 11 : i64} {
  func.func @_nn_cif_kernel(%arg0: i32, %arg1: memref<16x3072xbf16, #tpu.memory_space<vmem>>, %arg2: memref<3072x10xbf16, #tpu.memory_space<vmem>>, %arg3: memref<1x10xf32, #tpu.memory_space<vmem>>, %arg4: memref<10x300xbf16, #tpu.memory_space<vmem>>, %arg5: memref<1x300xf32, #tpu.memory_space<vmem>>, %arg6: memref<300x100xbf16, #tpu.memory_space<vmem>>, %arg7: memref<1x100xf32, #tpu.memory_space<vmem>>, %arg8: memref<16x100xf32, #tpu.memory_space<vmem>>) attributes {dimension_semantics = [#tpu.dimension_semantics<parallel>], iteration_bounds = array<i64: 1>, scalar_prefetch = 0 : i64, scratch_operands = 0 : i64, tpu.core_type = #tpu.core_type<tc>, window_params = [{transform_indices = @transform_0, window_bounds = array<i64: 16, 3072>}, {pipeline_mode = #tpu.pipeline_mode<synchronous>, transform_indices = @transform_1, window_bounds = array<i64: 3072, 10>}, {pipeline_mode = #tpu.pipeline_mode<synchronous>, transform_indices = @transform_2, window_bounds = array<i64: 1, 10>}, {pipeline_mode = #tpu.pipeline_mode<synchronous>, transform_indices = @transform_3, window_bounds = array<i64: 10, 300>}, {pipeline_mode = #tpu.pipeline_mode<synchronous>, transform_indices = @transform_4, window_bounds = array<i64: 1, 300>}, {pipeline_mode = #tpu.pipeline_mode<synchronous>, transform_indices = @transform_5, window_bounds = array<i64: 300, 100>}, {pipeline_mode = #tpu.pipeline_mode<synchronous>, transform_indices = @transform_6, window_bounds = array<i64: 1, 100>}, {transform_indices = @transform_7, window_bounds = array<i64: 16, 100>}]} {
    %c0 = arith.constant 0 : index
    %c0_0 = arith.constant 0 : index
    %0 = vector.load %arg1[%c0, %c0_0] : memref<16x3072xbf16, #tpu.memory_space<vmem>>, vector<16x3072xbf16>
    %c0_1 = arith.constant 0 : index
    %c0_2 = arith.constant 0 : index
    %1 = vector.load %arg2[%c0_1, %c0_2] : memref<3072x10xbf16, #tpu.memory_space<vmem>>, vector<3072x10xbf16>
    %cst = arith.constant dense<0.000000e+00> : vector<16x10xf32>
    %2 = tpu.matmul %0, %1, %cst {dimension_numbers = #tpu.dot_dimension_numbers<[1], [0], [0], [1], [0, 0, 1, 1], [], []>} : vector<16x3072xbf16>, vector<3072x10xbf16>, vector<16x10xf32> -> vector<16x10xf32>
    %c0_3 = arith.constant 0 : index
    %c0_4 = arith.constant 0 : index
    %3 = vector.load %arg3[%c0_3, %c0_4] : memref<1x10xf32, #tpu.memory_space<vmem>>, vector<1x10xf32>
    %4 = vector.broadcast %3 : vector<1x10xf32> to vector<16x10xf32>
    %5 = arith.addf %2, %4 : vector<16x10xf32>
    %cst_5 = arith.constant 0.000000e+00 : f32
    %6 = vector.broadcast %cst_5 : f32 to vector<16x10xf32>
    %7 = arith.maximumf %5, %6 : vector<16x10xf32>
    %8 = arith.truncf %7 : vector<16x10xf32> to vector<16x10xbf16>
    %c0_6 = arith.constant 0 : index
    %c0_7 = arith.constant 0 : index
    %9 = vector.load %arg4[%c0_6, %c0_7] : memref<10x300xbf16, #tpu.memory_space<vmem>>, vector<10x300xbf16>
    %cst_8 = arith.constant dense<0.000000e+00> : vector<16x300xf32>
    %10 = tpu.matmul %8, %9, %cst_8 {dimension_numbers = #tpu.dot_dimension_numbers<[1], [0], [0], [1], [0, 0, 1, 1], [], []>} : vector<16x10xbf16>, vector<10x300xbf16>, vector<16x300xf32> -> vector<16x300xf32>
    %c0_9 = arith.constant 0 : index
    %c0_10 = arith.constant 0 : index
    %11 = vector.load %arg5[%c0_9, %c0_10] : memref<1x300xf32, #tpu.memory_space<vmem>>, vector<1x300xf32>
    %12 = vector.broadcast %11 : vector<1x300xf32> to vector<16x300xf32>
    %13 = arith.addf %10, %12 : vector<16x300xf32>
    %cst_11 = arith.constant 0.000000e+00 : f32
    %14 = vector.broadcast %cst_11 : f32 to vector<16x300xf32>
    %15 = arith.maximumf %13, %14 : vector<16x300xf32>
    %16 = arith.truncf %15 : vector<16x300xf32> to vector<16x300xbf16>
    %c0_12 = arith.constant 0 : index
    %c0_13 = arith.constant 0 : index
    %17 = vector.load %arg6[%c0_12, %c0_13] : memref<300x100xbf16, #tpu.memory_space<vmem>>, vector<300x100xbf16>
    %cst_14 = arith.constant dense<0.000000e+00> : vector<16x100xf32>
    %18 = tpu.matmul %16, %17, %cst_14 {dimension_numbers = #tpu.dot_dimension_numbers<[1], [0], [0], [1], [0, 0, 1, 1], [], []>} : vector<16x300xbf16>, vector<300x100xbf16>, vector<16x100xf32> -> vector<16x100xf32>
    %c0_15 = arith.constant 0 : index
    %c0_16 = arith.constant 0 : index
    %19 = vector.load %arg7[%c0_15, %c0_16] : memref<1x100xf32, #tpu.memory_space<vmem>>, vector<1x100xf32>
    %20 = vector.broadcast %19 : vector<1x100xf32> to vector<16x100xf32>
    %21 = arith.addf %18, %20 : vector<16x100xf32>
    %c0_17 = arith.constant 0 : index
    %c0_18 = arith.constant 0 : index
    %22 = vector.load %arg8[%c0_17, %c0_18] : memref<16x100xf32, #tpu.memory_space<vmem>>, vector<16x100xf32>
    tpu.vector_store %arg8[%c0_17, %c0_18], %21 {strides = array<i32>} : memref<16x100xf32, #tpu.memory_space<vmem>>, vector<16x100xf32>,
    return
  }
  func.func @transform_0(%arg0: i32) -> (i32, i32) {
    %c0_i32 = arith.constant 0 : i32
    %c0_i32_0 = arith.constant 0 : i32
    return %arg0, %c0_i32 : i32, i32
  }
  func.func @transform_1(%arg0: i32) -> (i32, i32) {
    %c0_i32 = arith.constant 0 : i32
    %c0_i32_0 = arith.constant 0 : i32
    %c0_i32_1 = arith.constant 0 : i32
    return %c0_i32, %c0_i32_0 : i32, i32
  }
  func.func @transform_2(%arg0: i32) -> (i32, i32) {
    %c0_i32 = arith.constant 0 : i32
    %c0_i32_0 = arith.constant 0 : i32
    %c0_i32_1 = arith.constant 0 : i32
    return %c0_i32, %c0_i32_0 : i32, i32
  }
  func.func @transform_3(%arg0: i32) -> (i32, i32) {
    %c0_i32 = arith.constant 0 : i32
    %c0_i32_0 = arith.constant 0 : i32
    %c0_i32_1 = arith.constant 0 : i32
    return %c0_i32, %c0_i32_0 : i32, i32
  }
  func.func @transform_4(%arg0: i32) -> (i32, i32) {
    %c0_i32 = arith.constant 0 : i32
    %c0_i32_0 = arith.constant 0 : i32
    %c0_i32_1 = arith.constant 0 : i32
    return %c0_i32, %c0_i32_0 : i32, i32
  }
  func.func @transform_5(%arg0: i32) -> (i32, i32) {
    %c0_i32 = arith.constant 0 : i32
    %c0_i32_0 = arith.constant 0 : i32
    %c0_i32_1 = arith.constant 0 : i32
    return %c0_i32, %c0_i32_0 : i32, i32
  }
  func.func @transform_6(%arg0: i32) -> (i32, i32) {
    %c0_i32 = arith.constant 0 : i32
    %c0_i32_0 = arith.constant 0 : i32
    %c0_i32_1 = arith.constant 0 : i32
    return %c0_i32, %c0_i32_0 : i32, i32
  }
  func.func @transform_7(%arg0: i32) -> (i32, i32) {
    %c0_i32 = arith.constant 0 : i32
    %c0_i32_0 = arith.constant 0 : i32
    return %arg0, %c0_i32 : i32, i32
  }
}

</mosaic_0001>

<bundles_post_ra>
// kernel: tpu_custom_call.1
= control target key start
LH: loop header
LB: loop body
LE: loop exit
PB: predicated region body
PF: predicated region fallthrough
CT: control target
= control target key end

     0   :  { %v478_v30 = vlaneseq  ;;  %v3764_v33 = vmov 1966171168   ;;  %s4627_s0 = inlined_call_operand.vmem [shape: bf16[2,3072], index: 0, kind: input, shape index: {}]   ;;  %s4628_s1 = inlined_call_operand.vmem [shape: bf16[3072,10], index: 1, kind: input, shape index: {}]   ;;  %s4629_s2 = inlined_call_operand.vmem [shape: f32[1,10], index: 2, kind: input, shape index: {}]   ;;  %s4630_s3 = inlined_call_operand.vmem [shape: bf16[10,300], index: 3, kind: input, shape index: {}]   ;;  %s4631_s4 = inlined_call_operand.vmem [shape: f32[1,300], index: 4, kind: input, shape index: {}]   ;;  %s4632_s5 = inlined_call_operand.vmem [shape: bf16[300,100], index: 5, kind: input, shape index: {}]   ;;  %s4633_s6 = inlined_call_operand.vmem [shape: f32[1,100], index: 6, kind: input, shape index: {}]   ;;  %s4634_s7 = inlined_call_operand.hbm [shape: f32[16,100], index: 7, kind: output, shape index: {}]  }
   0x1   :  { %v3489_v0 = vld [vmem:[%s4628_s1 + $0x40] sm:$0xff]   ;;  %v3493_v4 = vld [vmem:[%s4628_s1 + $0x48] sm:$0xff]   ;;  %v3497_v8 = vld [vmem:[%s4628_s1 + $0x50] sm:$0xff]   ;;  %v476_v34 = vunpack.c.l.s4 %v3764_v33 }
   0x2   :  { %v3490_v1 = vld [vmem:[%s4628_s1 + $0xc0] sm:$0xff]   ;;  %3174 = vmatprep.subr.bf16.mxu0 %v3489_v0  ;;  %v3494_v5 = vld [vmem:[%s4628_s1 + $0xc8] sm:$0xff]   ;;  %v3498_v9 = vld [vmem:[%s4628_s1 + $0xd0] sm:$0xff]   ;;  %v3907_v35 = vshrl.u32 %v478_v30, 7 }
   0x3   :  { %v3491_v2 = vld [vmem:[%s4628_s1] sm:$0xff]   ;;  %3196 = vmatprep.subr.bf16.mxu1 %v3490_v1  ;;  %v3495_v6 = vld [vmem:[%s4628_s1 + $0x8] sm:$0xff]   ;;  %v3499_v10 = vld [vmem:[%s4628_s1 + $0x10] sm:$0xff]   ;;  %v477_v40 = vunpack.c.0.s8 %v476_v34 }
   0x4   :  { %v3492_v3 = vld [vmem:[%s4628_s1 + $0x80] sm:$0xff]   ;;  %3175 = vmatpush3.bf16.msra.mxu0 %v3491_v2  ;;  %v3496_v7 = vld [vmem:[%s4628_s1 + $0x88] sm:$0xff]   ;;  %v3500_v11 = vld [vmem:[%s4628_s1 + $0x90] sm:$0xff]  }
   0x5   :  { %3197 = vmatpush3.bf16.msra.mxu1 %v3492_v3  ;;  %3176 = vmatprep.subr.bf16.mxu0 %v3493_v4  ;;  %v3501_v12 = vld [vmem:[%s4628_s1 + $0x58] sm:$0xff]   ;;  %v3505_v16 = vld [vmem:[%s4628_s1 + $0x60] sm:$0xff]   ;;  %v3509_v20 = vld [vmem:[%s4628_s1 + $0x68] sm:$0xff]   ;;  %v3934_v45 = vsub.s32 %v477_v40, %v3907_v35 }
   0x6   :  { %3198 = vmatprep.subr.bf16.mxu1 %v3494_v5  ;;  %v3502_v13 = vld [vmem:[%s4628_s1 + $0xd8] sm:$0xff]   ;;  %v3506_v17 = vld [vmem:[%s4628_s1 + $0xe0] sm:$0xff]   ;;  %v3510_v21 = vld [vmem:[%s4628_s1 + $0xe8] sm:$0xff]  }
   0x7   :  { %v3503_v14 = vld [vmem:[%s4628_s1 + $0x18] sm:$0xff]   ;;  %v3507_v18 = vld [vmem:[%s4628_s1 + $0x20] sm:$0xff]   ;;  %v3511_v22 = vld [vmem:[%s4628_s1 + $0x28] sm:$0xff]  }
   0x8   :  { %3177 = vmatpush3.bf16.msra.mxu0 %v3495_v6  ;;  %v3504_v15 = vld [vmem:[%s4628_s1 + $0x98] sm:$0xff]   ;;  %v3508_v19 = vld [vmem:[%s4628_s1 + $0xa0] sm:$0xff]   ;;  %v3512_v23 = vld [vmem:[%s4628_s1 + $0xa8] sm:$0xff]  }
   0x9   :  { %3199 = vmatpush3.bf16.msra.mxu1 %v3496_v7  ;;  %3178 = vmatprep.subr.bf16.mxu0 %v3497_v8  ;;  %v3513_v24 = vld [vmem:[%s4628_s1 + $0x70] sm:$0xff]   ;;  %v3517_v28 = vld [vmem:[%s4628_s1 + $0x78] sm:$0xff]   ;;  %v3533_v46 = vld [vmem:[%s4628_s1 + $0x140] sm:$0xff]  }
   0xa   :  { %3200 = vmatprep.subr.bf16.mxu1 %v3498_v9  ;;  %v3514_v25 = vld [vmem:[%s4628_s1 + $0xf0] sm:$0xff]   ;;  %v3518_v29 = vld [vmem:[%s4628_s1 + $0xf8] sm:$0xff]   ;;  %v3534_v51 = vld [vmem:[%s4628_s1 + $0x1c0] sm:$0xff]  }
   0xb   :  { %v3515_v26 = vld [vmem:[%s4628_s1 + $0x30] sm:$0xff]   ;;  %v3519_v31 = vld [vmem:[%s4628_s1 + $0x38] sm:$0xff]   ;;  %v3535_v2 = vld [vmem:[%s4628_s1 + $0x100] sm:$0xff]  }
   0xc   :  { %3179 = vmatpush3.bf16.msra.mxu0 %v3499_v10  ;;  %v3516_v27 = vld [vmem:[%s4628_s1 + $0xb0] sm:$0xff]   ;;  %v3520_v32 = vld [vmem:[%s4628_s1 + $0xb8] sm:$0xff]   ;;  %v3536_v3 = vld [vmem:[%s4628_s1 + $0x180] sm:$0xff]  }
   0xd   :  { %3201 = vmatpush3.bf16.msra.mxu1 %v3500_v11  ;;  %3180 = vmatprep.subr.bf16.mxu0 %v3501_v12  ;;  %v3521_v36 = vld [vmem:[%s4627_s0] ss:$24 sps:$4 sm:$0xff]   ;;  %v3523_v37 = vld [vmem:[%s4627_s0 + $0x4] ss:$24 sps:$4 sm:$0xff]   ;;  %v3524_v38 = vld [vmem:[%s4627_s0 + $0x30] ss:$24 sps:$4 sm:$0xff]  }
   0xe   :  { %3202 = vmatprep.subr.bf16.mxu1 %v3502_v13  ;;  %v3526_v39 = vld [vmem:[%s4627_s0 + $0x34] ss:$24 sps:$4 sm:$0xff]   ;;  %v3527_v41 = vld [vmem:[%s4627_s0 + $0x60] ss:$24 sps:$4 sm:$0xff]   ;;  %v3529_v42 = vld [vmem:[%s4627_s0 + $0x64] ss:$24 sps:$4 sm:$0xff]   ;;  %v481_v47 = vrot.slane %v3521_v36, %v3934_v45  ;;  %v495_v48 = vrot.slane %v3524_v38, %v3934_v45  ;;  %v3947_v52 = vrot.slane %v3523_v37, %v3934_v45 }
   0xf   :  { %v3530_v43 = vld [vmem:[%s4627_s0 + $0x90] ss:$24 sps:$4 sm:$0xff]   ;;  %v3532_v44 = vld [vmem:[%s4627_s0 + $0x94] ss:$24 sps:$4 sm:$0xff]   ;;  %v509_v49 = vrot.slane %v3527_v41, %v3934_v45  ;;  %v3950_v53 = vrot.slane %v3526_v39, %v3934_v45  ;;  %v3953_v54 = vrot.slane %v3529_v42, %v3934_v45  ;;  %v3561_v39 = vld [vmem:[%s4628_s1 + $0x178] sm:$0xff]  }
  0x10   :  { %3181 = vmatpush3.bf16.msra.mxu0 %v3503_v14  ;;  %v523_v50 = vrot.slane %v3530_v43, %v3934_v45  ;;  %v3956_v55 = vrot.slane %v3532_v44, %v3934_v45  ;;  %v532_v56 = vcombine.high %v481_v47, %v495_v48  ;;  %v531_v58 = vcombine.low %v481_v47, %v495_v48  ;;  %v3537_v10 = vld [vmem:[%s4628_s1 + $0x148] sm:$0xff]   ;;  %v3558_v33 = vld [vmem:[%s4628_s1 + $0x1f0] sm:$0xff]   ;;  %v3562_v40 = vld [vmem:[%s4628_s1 + $0x1f8] sm:$0xff]  }
  0x11   :  { %3203 = vmatpush3.bf16.msra.mxu1 %v3504_v15  ;;  %3182 = vmatprep.subr.bf16.mxu0 %v3505_v16  ;;  %v534_v60 = vcombine.high %v3947_v52, %v3950_v53  ;;  %v3538_v11 = vld [vmem:[%s4628_s1 + $0x1c8] sm:$0xff]   ;;  %v3541_v16 = vld [vmem:[%s4628_s1 + $0x150] sm:$0xff]   ;;  %v533_v37 = vcombine.low %v3947_v52, %v3950_v53  ;;  %v3563_v41 = vld [vmem:[%s4628_s1 + $0x138] sm:$0xff]  }
  0x12   :  { %3204 = vmatprep.subr.bf16.mxu1 %v3506_v17  ;;  %v536_v57 = vcombine.high %v509_v49, %v523_v50  ;;  %v535_v59 = vcombine.low %v509_v49, %v523_v50  ;;  %v538_v61 = vcombine.high %v3953_v54, %v3956_v55  ;;  %v559_v62 = vrot.slane %v532_v56, %v3934_v45  ;;  %v3539_v12 = vld [vmem:[%s4628_s1 + $0x108] sm:$0xff]   ;;  %v3542_v17 = vld [vmem:[%s4628_s1 + $0x1d0] sm:$0xff]   ;;  %v3564_v42 = vld [vmem:[%s4628_s1 + $0x1b8] sm:$0xff]  }
  0x13   :  { %v545_v0 = vrot.slane %v531_v58, %v3934_v45  ;;  %v566_v4 = vrot.slane %v534_v60, %v3934_v45  ;;  %v3540_v15 = vld [vmem:[%s4628_s1 + $0x188] sm:$0xff]   ;;  %v3559_v34 = vld [vmem:[%s4628_s1 + $0x130] sm:$0xff]   ;;  %v537_v38 = vcombine.low %v3953_v54, %v3956_v55  ;;  %v552_v43 = vrot.slane %v533_v37, %v3934_v45  ;;  %v3566_v47 = vld [vmem:[%s4628_s1 + $0x2c0] sm:$0xff]  }
  0x14   :  { %3183 = vmatpush3.bf16.msra.mxu0 %v3507_v18  ;;  %v587_v63 = vrot.slane %v536_v57, %v3934_v45  ;;  %v573_v1 = vrot.slane %v535_v59, %v3934_v45  ;;  %v594_v5 = vrot.slane %v538_v61, %v3934_v45  ;;  %v3543_v18 = vld [vmem:[%s4628_s1 + $0x110] sm:$0xff]   ;;  %v3555_v30 = vld [vmem:[%s4628_s1 + $0x128] sm:$0xff]   ;;  %v3567_v48 = vld [vmem:[%s4628_s1 + $0x200] sm:$0xff]  }
  0x15   :  { %3205 = vmatpush3.bf16.msra.mxu1 %v3508_v19  ;;  %3184 = vmatprep.subr.bf16.mxu0 %v3509_v20  ;;  %v3544_v19 = vld [vmem:[%s4628_s1 + $0x190] sm:$0xff]   ;;  %v3545_v20 = vld [vmem:[%s4628_s1 + $0x158] sm:$0xff]   ;;  %v580_v44 = vrot.slane %v537_v38, %v3934_v45  ;;  %v3569_v52 = vld [vmem:[%s4628_s1 + $0x248] sm:$0xff]  }
  0x16   :  { %3206 = vmatprep.subr.bf16.mxu1 %v3510_v21  ;;  %v599_v6 = vcombine.low %v559_v62, %v587_v63  ;;  %v600_v7 = vcombine.high %v559_v62, %v587_v63  ;;  %v595_v8 = vcombine.low %v545_v0, %v573_v1  ;;  %v596_v9 = vcombine.high %v545_v0, %v573_v1  ;;  %v3546_v21 = vld [vmem:[%s4628_s1 + $0x1d8] sm:$0xff]   ;;  %v3560_v36 = vld [vmem:[%s4628_s1 + $0x1b0] sm:$0xff]   ;;  %v3570_v53 = vld [vmem:[%s4628_s1 + $0x2c8] sm:$0xff]  }
  0x17   :  { %v601_v13 = vcombine.low %v566_v4, %v594_v5  ;;  %v602_v14 = vcombine.high %v566_v4, %v594_v5  ;;  %v597_v49 = vcombine.low %v552_v43, %v580_v44  ;;  %v598_v50 = vcombine.high %v552_v43, %v580_v44  ;;  %v3571_v54 = vld [vmem:[%s4628_s1 + $0x208] sm:$0xff]   ;;  %v3573_v56 = vld [vmem:[%s4628_s1 + $0x250] sm:$0xff]   ;;  %v3577_v60 = vld [vmem:[%s4628_s1 + $0x258] sm:$0xff]  }
  0x18   :  { %3185 = vmatpush3.bf16.msra.mxu0 %v3511_v22  ;;  %2083 = vmatprep.mubr.bf16.mxu0 %v599_v6  ;;  %v3547_v22 = vld [vmem:[%s4628_s1 + $0x118] sm:$0xff]   ;;  %v3572_v55 = vld [vmem:[%s4628_s1 + $0x288] sm:$0xff]   ;;  %v3574_v57 = vld [vmem:[%s4628_s1 + $0x2d0] sm:$0xff]  }
  0x19   :  { %3207 = vmatpush3.bf16.msra.mxu1 %v3512_v23  ;;  %3186 = vmatprep.subr.bf16.mxu0 %v3513_v24  ;;  %v3548_v23 = vld [vmem:[%s4628_s1 + $0x198] sm:$0xff]   ;;  %v3549_v24 = vld [vmem:[%s4628_s1 + $0x160] sm:$0xff]   ;;  %v3575_v58 = vld [vmem:[%s4628_s1 + $0x210] sm:$0xff]  }
  0x1a   :  { %3208 = vmatprep.subr.bf16.mxu1 %v3514_v25  ;;  %2124 = vmatprep.mubr.bf16.mxu1 %v600_v7  ;;  %v3550_v25 = vld [vmem:[%s4628_s1 + $0x1e0] sm:$0xff]   ;;  %v3576_v59 = vld [vmem:[%s4628_s1 + $0x290] sm:$0xff]   ;;  %v3578_v61 = vld [vmem:[%s4628_s1 + $0x2d8] sm:$0xff]  }
  0x1b   :  { %v3579_v62 = vld [vmem:[%s4628_s1 + $0x218] sm:$0xff]   ;;  %v3581_v0 = vld [vmem:[%s4628_s1 + $0x260] sm:$0xff]   ;;  %v3585_v4 = vld [vmem:[%s4628_s1 + $0x268] sm:$0xff]  }
  0x1c   :  { %3187 = vmatpush3.bf16.msra.mxu0 %v3515_v26  ;;  %v3551_v26 = vld [vmem:[%s4628_s1 + $0x120] sm:$0xff]   ;;  %v3580_v63 = vld [vmem:[%s4628_s1 + $0x298] sm:$0xff]   ;;  %v3586_v5 = vld [vmem:[%s4628_s1 + $0x2e8] sm:$0xff]  }
  0x1d   :  { %3209 = vmatpush3.bf16.msra.mxu1 %v3516_v27  ;;  %3188 = vmatprep.subr.bf16.mxu0 %v3517_v28  ;;  %v3552_v27 = vld [vmem:[%s4628_s1 + $0x1a0] sm:$0xff]   ;;  %v3553_v28 = vld [vmem:[%s4628_s1 + $0x168] sm:$0xff]  }
  0x1e   :  { %3210 = vmatprep.subr.bf16.mxu1 %v3518_v29  ;;  %v3554_v29 = vld [vmem:[%s4628_s1 + $0x1e8] sm:$0xff]   ;;  %v3582_v1 = vld [vmem:[%s4628_s1 + $0x2e0] sm:$0xff]  }
  0x1f   :  { %v3587_v6 = vld [vmem:[%s4628_s1 + $0x228] sm:$0xff]  }
  0x20   :  { %3189 = vmatpush3.bf16.msra.mxu0 %v3519_v31  ;;  %v3556_v31 = vld [vmem:[%s4628_s1 + $0x1a8] sm:$0xff]  }
  0x21   :  { %3211 = vmatpush3.bf16.msra.mxu1 %v3520_v32  ;;  %3218 = vmatprep.subr.bf16.mxu0 %v3533_v46  ;;  %v3557_v32 = vld [vmem:[%s4628_s1 + $0x170] sm:$0xff]   ;;  %v3565_v46 = vld [vmem:[%s4628_s1 + $0x240] sm:$0xff]   ;;  %v3588_v7 = vld [vmem:[%s4628_s1 + $0x2a8] sm:$0xff]  }
  0x22   :  { %3240 = vmatprep.subr.bf16.mxu1 %v3534_v51  ;;  %v3568_v51 = vld [vmem:[%s4628_s1 + $0x280] sm:$0xff]   ;;  %v3611_v43 = vld [vmem:[%s4628_s1 + $0x308] sm:$0xff]  }
  0x23   :  { %2084 = vmatmul.mubr.bf16.vlgmr.msra.gmra.mrb[0].mxu0 %v595_v8  ;;  %v3589_v8 = vld [vmem:[%s4628_s1 + $0x270] sm:$0xff]   ;;  %v3612_v44 = vld [vmem:[%s4628_s1 + $0x388] sm:$0xff]  }
  0x24   :  { %2125 = vmatmul.mubr.bf16.vlgmr.msra.gmra.mrb[0].mxu1 %v596_v9  ;;  %3219 = vmatpush3.bf16.msra.mxu0 %v3535_v2  ;;  %v3583_v2 = vld [vmem:[%s4628_s1 + $0x220] sm:$0xff]   ;;  %v3590_v9 = vld [vmem:[%s4628_s1 + $0x2f0] sm:$0xff]  }
  0x25   :  { %3241 = vmatpush3.bf16.msra.mxu1 %v3536_v3  ;;  %3220 = vmatprep.subr.bf16.mxu0 %v3537_v10  ;;  %v3584_v3 = vld [vmem:[%s4628_s1 + $0x2a0] sm:$0xff]   ;;  %v3591_v10 = vld [vmem:[%s4628_s1 + $0x230] sm:$0xff]  }
  0x26   :  { %3242 = vmatprep.subr.bf16.mxu1 %v3538_v11  ;;  %2165 = vmatprep.mubr.bf16.mxu0 %v601_v13  ;;  %v3592_v11 = vld [vmem:[%s4628_s1 + $0x2b0] sm:$0xff]   ;;  %v3594_v13 = vld [vmem:[%s4628_s1 + $0x2f8] sm:$0xff]  }
  0x27   :  { %2206 = vmatprep.mubr.bf16.mxu1 %v602_v14  ;;  %v3595_v14 = vld [vmem:[%s4628_s1 + $0x238] sm:$0xff]  }
  0x28   :  { %3221 = vmatpush3.bf16.msra.mxu0 %v3539_v12  ;;  %v3593_v12 = vld [vmem:[%s4628_s1 + $0x278] sm:$0xff]  }
  0x29   :  { %3243 = vmatpush3.bf16.msra.mxu1 %v3540_v15  ;;  %3222 = vmatprep.subr.bf16.mxu0 %v3541_v16  ;;  %v3596_v15 = vld [vmem:[%s4628_s1 + $0x2b8] sm:$0xff]   ;;  %v3597_v16 = vld [vmem:[%s4627_s0 + $0x8] ss:$24 sps:$4 sm:$0xff]  }
  0x2a   :  { %3244 = vmatprep.subr.bf16.mxu1 %v3542_v17  ;;  %v3599_v17 = vld [vmem:[%s4627_s0 + $0x38] ss:$24 sps:$4 sm:$0xff]  }
  0x2c   :  { %3223 = vmatpush3.bf16.msra.mxu0 %v3543_v18  ;;  %v3601_v18 = vld [vmem:[%s4627_s0 + $0x68] ss:$24 sps:$4 sm:$0xff]  }
  0x2d   :  { %3245 = vmatpush3.bf16.msra.mxu1 %v3544_v19  ;;  %3224 = vmatprep.subr.bf16.mxu0 %v3545_v20  ;;  %v3603_v19 = vld [vmem:[%s4627_s0 + $0x98] ss:$24 sps:$4 sm:$0xff]   ;;  %v617_v20 = vrot.slane %v3597_v16, %v3934_v45 }
  0x2e   :  { %3246 = vmatprep.subr.bf16.mxu1 %v3546_v21  ;;  %v631_v21 = vrot.slane %v3599_v17, %v3934_v45 }
  0x30   :  { %3225 = vmatpush3.bf16.msra.mxu0 %v3547_v22  ;;  %v645_v22 = vrot.slane %v3601_v18, %v3934_v45  ;;  %v3641_v18 = vld [vmem:[%s4628_s1 + $0x440] sm:$0xff]  }
  0x31   :  { %3247 = vmatpush3.bf16.msra.mxu1 %v3548_v23  ;;  %3226 = vmatprep.subr.bf16.mxu0 %v3549_v24  ;;  %v3605_v23 = vld [vmem:[%s4628_s1 + $0x340] sm:$0xff]   ;;  %v659_v24 = vrot.slane %v3603_v19, %v3934_v45 }
  0x32   :  { %3248 = vmatprep.subr.bf16.mxu1 %v3550_v25  ;;  %v3606_v25 = vld [vmem:[%s4628_s1 + $0x3c0] sm:$0xff]  }
  0x34   :  { %3227 = vmatpush3.bf16.msra.mxu0 %v3551_v26  ;;  %v668_v26 = vcombine.high %v617_v20, %v631_v21 }
  0x35   :  { %3249 = vmatpush3.bf16.msra.mxu1 %v3552_v27  ;;  %3228 = vmatprep.subr.bf16.mxu0 %v3553_v28  ;;  %v667_v27 = vcombine.low %v617_v20, %v631_v21  ;;  %v672_v28 = vcombine.high %v645_v22, %v659_v24  ;;  %v3642_v21 = vld [vmem:[%s4628_s1 + $0x4c0] sm:$0xff]  }
  0x36   :  { %3250 = vmatprep.subr.bf16.mxu1 %v3554_v29  ;;  %v671_v29 = vcombine.low %v645_v22, %v659_v24  ;;  %v3643_v24 = vld [vmem:[%s4628_s1 + $0x400] sm:$0xff]  }
  0x38   :  { %3229 = vmatpush3.bf16.msra.mxu0 %v3555_v30  ;;  %v695_v30 = vrot.slane %v668_v26, %v3934_v45 }
  0x39   :  { %3251 = vmatpush3.bf16.msra.mxu1 %v3556_v31  ;;  %3230 = vmatprep.subr.bf16.mxu0 %v3557_v32  ;;  %v681_v31 = vrot.slane %v667_v27, %v3934_v45  ;;  %v723_v32 = vrot.slane %v672_v28, %v3934_v45 }
  0x3a   :  { %3252 = vmatprep.subr.bf16.mxu1 %v3558_v33  ;;  %v709_v33 = vrot.slane %v671_v29, %v3934_v45 }
  0x3b   :  { %v735_v37 = vcombine.low %v695_v30, %v723_v32  ;;  %v736_v38 = vcombine.high %v695_v30, %v723_v32  ;;  %v3645_v30 = vld [vmem:[%s4628_s1 + $0x448] sm:$0xff]  }
  0x3c   :  { %3231 = vmatpush3.bf16.msra.mxu0 %v3559_v34  ;;  %v3607_v34 = vld [vmem:[%s4628_s1 + $0x300] sm:$0xff]   ;;  %v3647_v32 = vld [vmem:[%s4628_s1 + $0x408] sm:$0xff]  }
  0x3d   :  { %3253 = vmatpush3.bf16.msra.mxu1 %v3560_v36  ;;  %3232 = vmatprep.subr.bf16.mxu0 %v3561_v39  ;;  %v3608_v36 = vld [vmem:[%s4628_s1 + $0x380] sm:$0xff]   ;;  %v731_v39 = vcombine.low %v681_v31, %v709_v33 }
  0x3e   :  { %3254 = vmatprep.subr.bf16.mxu1 %v3562_v40  ;;  %v732_v40 = vcombine.high %v681_v31, %v709_v33  ;;  %v3646_v31 = vld [vmem:[%s4628_s1 + $0x4c8] sm:$0xff]  }
  0x3f   :  { %v3648_v33 = vld [vmem:[%s4628_s1 + $0x488] sm:$0xff]  }
  0x40   :  { %3233 = vmatpush3.bf16.msra.mxu0 %v3563_v41  ;;  %v3609_v41 = vld [vmem:[%s4628_s1 + $0x348] sm:$0xff]  }
  0x41   :  { %3255 = vmatpush3.bf16.msra.mxu1 %v3564_v42  ;;  %3262 = vmatprep.subr.bf16.mxu0 %v3565_v46  ;;  %v3610_v42 = vld [vmem:[%s4628_s1 + $0x3c8] sm:$0xff]   ;;  %v3613_v46 = vld [vmem:[%s4628_s1 + $0x350] sm:$0xff]  }
  0x42   :  { %3284 = vmatprep.subr.bf16.mxu1 %v3566_v47  ;;  %v3614_v47 = vld [vmem:[%s4628_s1 + $0x3d0] sm:$0xff]  }
  0x43   :  { %2166 = vmatmul.mubr.bf16.vlgmr.msra.gmra.mrb[4].mxu0 %v597_v49  ;;  %v3616_v49 = vld [vmem:[%s4628_s1 + $0x390] sm:$0xff]  }
  0x44   :  { %2207 = vmatmul.mubr.bf16.vlgmr.msra.gmra.mrb[4].mxu1 %v598_v50  ;;  %3263 = vmatpush3.bf16.msra.mxu0 %v3567_v48  ;;  %v3615_v48 = vld [vmem:[%s4628_s1 + $0x310] sm:$0xff]   ;;  %v3617_v50 = vld [vmem:[%s4628_s1 + $0x358] sm:$0xff]  }
  0x45   :  { %3285 = vmatpush3.bf16.msra.mxu1 %v3568_v51  ;;  %3264 = vmatprep.subr.bf16.mxu0 %v3569_v52  ;;  %v3618_v51 = vld [vmem:[%s4628_s1 + $0x3d8] sm:$0xff]  }
  0x46   :  { %3286 = vmatprep.subr.bf16.mxu1 %v3570_v53  ;;  %2247 = vmatprep.mubr.bf16.mxu0 %v735_v37  ;;  %v3619_v52 = vld [vmem:[%s4628_s1 + $0x318] sm:$0xff]   ;;  %v3651_v37 = vld [vmem:[%s4628_s1 + $0x410] sm:$0xff]  }
  0x47   :  { %2288 = vmatprep.mubr.bf16.mxu1 %v736_v38  ;;  %v3620_v53 = vld [vmem:[%s4628_s1 + $0x398] sm:$0xff]   ;;  %v3652_v38 = vld [vmem:[%s4628_s1 + $0x490] sm:$0xff]  }
  0x48   :  { %3265 = vmatpush3.bf16.msra.mxu0 %v3571_v54  ;;  %v3621_v54 = vld [vmem:[%s4628_s1 + $0x360] sm:$0xff]  }
  0x49   :  { %3287 = vmatpush3.bf16.msra.mxu1 %v3572_v55  ;;  %3266 = vmatprep.subr.bf16.mxu0 %v3573_v56  ;;  %v3622_v55 = vld [vmem:[%s4628_s1 + $0x3e0] sm:$0xff]  }
  0x4a   :  { %3288 = vmatprep.subr.bf16.mxu1 %v3574_v57  ;;  %v3623_v56 = vld [vmem:[%s4628_s1 + $0x320] sm:$0xff]  }
  0x4b   :  { %v3624_v57 = vld [vmem:[%s4628_s1 + $0x3a0] sm:$0xff]  }
  0x4c   :  { %3267 = vmatpush3.bf16.msra.mxu0 %v3575_v58  ;;  %v3625_v58 = vld [vmem:[%s4628_s1 + $0x368] sm:$0xff]  }
  0x4d   :  { %3289 = vmatpush3.bf16.msra.mxu1 %v3576_v59  ;;  %3268 = vmatprep.subr.bf16.mxu0 %v3577_v60  ;;  %v3626_v59 = vld [vmem:[%s4628_s1 + $0x3e8] sm:$0xff]  }
  0x4e   :  { %3290 = vmatprep.subr.bf16.mxu1 %v3578_v61  ;;  %v3627_v60 = vld [vmem:[%s4628_s1 + $0x328] sm:$0xff]  }
  0x4f   :  { %v3628_v61 = vld [vmem:[%s4628_s1 + $0x3a8] sm:$0xff]  }
  0x50   :  { %3269 = vmatpush3.bf16.msra.mxu0 %v3579_v62  ;;  %v3629_v62 = vld [vmem:[%s4628_s1 + $0x370] sm:$0xff]  }
  0x51   :  { %3291 = vmatpush3.bf16.msra.mxu1 %v3580_v63  ;;  %3270 = vmatprep.subr.bf16.mxu0 %v3581_v0  ;;  %v3630_v63 = vld [vmem:[%s4628_s1 + $0x3f0] sm:$0xff]  }
  0x52   :  { %3292 = vmatprep.subr.bf16.mxu1 %v3582_v1  ;;  %v3631_v0 = vld [vmem:[%s4628_s1 + $0x330] sm:$0xff]  }
  0x53   :  { %v3632_v1 = vld [vmem:[%s4628_s1 + $0x3b0] sm:$0xff]  }
  0x54   :  { %3271 = vmatpush3.bf16.msra.mxu0 %v3583_v2  ;;  %v3633_v2 = vld [vmem:[%s4628_s1 + $0x378] sm:$0xff]  }
  0x55   :  { %3293 = vmatpush3.bf16.msra.mxu1 %v3584_v3  ;;  %3272 = vmatprep.subr.bf16.mxu0 %v3585_v4  ;;  %v3634_v3 = vld [vmem:[%s4628_s1 + $0x3f8] sm:$0xff]   ;;  %v3637_v4 = vld [vmem:[%s4627_s0 + $0xc] ss:$24 sps:$4 sm:$0xff]  }
  0x56   :  { %3294 = vmatprep.subr.bf16.mxu1 %v3586_v5  ;;  %v3638_v5 = vld [vmem:[%s4627_s0 + $0x3c] ss:$24 sps:$4 sm:$0xff]  }
  0x58   :  { %3273 = vmatpush3.bf16.msra.mxu0 %v3587_v6  ;;  %v3639_v6 = vld [vmem:[%s4627_s0 + $0x6c] ss:$24 sps:$4 sm:$0xff]  }
  0x59   :  { %3295 = vmatpush3.bf16.msra.mxu1 %v3588_v7  ;;  %3274 = vmatprep.subr.bf16.mxu0 %v3589_v8  ;;  %v3640_v7 = vld [vmem:[%s4627_s0 + $0x9c] ss:$24 sps:$4 sm:$0xff]   ;;  %v624_v8 = vrot.slane %v3637_v4, %v3934_v45 }
  0x5a   :  { %3296 = vmatprep.subr.bf16.mxu1 %v3590_v9  ;;  %v638_v9 = vrot.slane %v3638_v5, %v3934_v45  ;;  %v3682_v5 = vld [vmem:[%s4628_s1 + $0x5c0] sm:$0xff]  }
  0x5c   :  { %3275 = vmatpush3.bf16.msra.mxu0 %v3591_v10  ;;  %v3635_v10 = vld [vmem:[%s4628_s1 + $0x338] sm:$0xff]  }
  0x5d   :  { %3297 = vmatpush3.bf16.msra.mxu1 %v3592_v11  ;;  %3276 = vmatprep.subr.bf16.mxu0 %v3593_v12  ;;  %v652_v11 = vrot.slane %v3639_v6, %v3934_v45  ;;  %v666_v12 = vrot.slane %v3640_v7, %v3934_v45 }
  0x5e   :  { %3298 = vmatprep.subr.bf16.mxu1 %v3594_v13  ;;  %v3636_v13 = vld [vmem:[%s4628_s1 + $0x3b8] sm:$0xff]  }
  0x5f   :  { %v674_v16 = vcombine.high %v652_v11, %v666_v12  ;;  %v673_v17 = vcombine.low %v652_v11, %v666_v12 }
  0x60   :  { %3277 = vmatpush3.bf16.msra.mxu0 %v3595_v14  ;;  %v670_v14 = vcombine.high %v624_v8, %v638_v9 }
  0x61   :  { %3299 = vmatpush3.bf16.msra.mxu1 %v3596_v15  ;;  %3306 = vmatprep.subr.bf16.mxu0 %v3605_v23  ;;  %v669_v15 = vcombine.low %v624_v8, %v638_v9  ;;  %v730_v22 = vrot.slane %v674_v16, %v3934_v45  ;;  %v716_v23 = vrot.slane %v673_v17, %v3934_v45 }
  0x62   :  { %3328 = vmatprep.subr.bf16.mxu1 %v3606_v25  ;;  %v702_v19 = vrot.slane %v670_v14, %v3934_v45  ;;  %v3644_v25 = vld [vmem:[%s4628_s1 + $0x480] sm:$0xff]  }
  0x63   :  { %2248 = vmatmul.mubr.bf16.vlgmr.msra.gmra.mrb[8].mxu0 %v731_v39  ;;  %v688_v20 = vrot.slane %v669_v15, %v3934_v45  ;;  %v3653_v39 = vld [vmem:[%s4628_s1 + $0x458] sm:$0xff]   ;;  %v3683_v14 = vld [vmem:[%s4628_s1 + $0x500] sm:$0xff]  }
  0x64   :  { %2289 = vmatmul.mubr.bf16.vlgmr.msra.gmra.mrb[8].mxu1 %v732_v40  ;;  %3307 = vmatpush3.bf16.msra.mxu0 %v3607_v34  ;;  %v737_v26 = vcombine.low %v702_v19, %v730_v22  ;;  %v738_v27 = vcombine.high %v702_v19, %v730_v22  ;;  %v3649_v34 = vld [vmem:[%s4628_s1 + $0x450] sm:$0xff]   ;;  %v3654_v40 = vld [vmem:[%s4628_s1 + $0x4d8] sm:$0xff]   ;;  %v3684_v15 = vld [vmem:[%s4628_s1 + $0x580] sm:$0xff]  }
  0x65   :  { %3329 = vmatpush3.bf16.msra.mxu1 %v3608_v36  ;;  %3308 = vmatprep.subr.bf16.mxu0 %v3609_v41  ;;  %v733_v28 = vcombine.low %v688_v20, %v716_v23  ;;  %v734_v29 = vcombine.high %v688_v20, %v716_v23  ;;  %v3650_v36 = vld [vmem:[%s4628_s1 + $0x4d0] sm:$0xff]   ;;  %v3655_v41 = vld [vmem:[%s4628_s1 + $0x418] sm:$0xff]   ;;  %v3685_v20 = vld [vmem:[%s4628_s1 + $0x548] sm:$0xff]  }
  0x66   :  { %3330 = vmatprep.subr.bf16.mxu1 %v3610_v42  ;;  %2329 = vmatprep.mubr.bf16.mxu0 %v737_v26  ;;  %v3656_v42 = vld [vmem:[%s4628_s1 + $0x498] sm:$0xff]   ;;  %v3687_v22 = vld [vmem:[%s4628_s1 + $0x508] sm:$0xff]   ;;  %v3691_v26 = vld [vmem:[%s4628_s1 + $0x510] sm:$0xff]  }
  0x67   :  { %2370 = vmatprep.mubr.bf16.mxu1 %v738_v27  ;;  %v3688_v23 = vld [vmem:[%s4628_s1 + $0x588] sm:$0xff]   ;;  %v3692_v27 = vld [vmem:[%s4628_s1 + $0x590] sm:$0xff]  }
  0x68   :  { %3309 = vmatpush3.bf16.msra.mxu0 %v3611_v43  ;;  %v3657_v43 = vld [vmem:[%s4628_s1 + $0x460] sm:$0xff]  }
  0x69   :  { %3331 = vmatpush3.bf16.msra.mxu1 %v3612_v44  ;;  %3310 = vmatprep.subr.bf16.mxu0 %v3613_v46  ;;  %v3658_v44 = vld [vmem:[%s4628_s1 + $0x4e0] sm:$0xff]  }
  0x6a   :  { %3332 = vmatprep.subr.bf16.mxu1 %v3614_v47  ;;  %v3659_v46 = vld [vmem:[%s4628_s1 + $0x420] sm:$0xff]  }
  0x6b   :  { %v3660_v47 = vld [vmem:[%s4628_s1 + $0x4a0] sm:$0xff]  }
  0x6c   :  { %3311 = vmatpush3.bf16.msra.mxu0 %v3615_v48  ;;  %v3661_v48 = vld [vmem:[%s4628_s1 + $0x468] sm:$0xff]  }
  0x6d   :  { %3333 = vmatpush3.bf16.msra.mxu1 %v3616_v49  ;;  %3312 = vmatprep.subr.bf16.mxu0 %v3617_v50  ;;  %v3662_v49 = vld [vmem:[%s4628_s1 + $0x4e8] sm:$0xff]  }
  0x6e   :  { %3334 = vmatprep.subr.bf16.mxu1 %v3618_v51  ;;  %v3663_v50 = vld [vmem:[%s4628_s1 + $0x428] sm:$0xff]  }
  0x6f   :  { %v3664_v51 = vld [vmem:[%s4628_s1 + $0x4a8] sm:$0xff]  }
  0x70   :  { %3313 = vmatpush3.bf16.msra.mxu0 %v3619_v52  ;;  %v3665_v52 = vld [vmem:[%s4628_s1 + $0x470] sm:$0xff]  }
  0x71   :  { %3335 = vmatpush3.bf16.msra.mxu1 %v3620_v53  ;;  %3314 = vmatprep.subr.bf16.mxu0 %v3621_v54  ;;  %v3666_v53 = vld [vmem:[%s4628_s1 + $0x4f0] sm:$0xff]  }
  0x72   :  { %3336 = vmatprep.subr.bf16.mxu1 %v3622_v55  ;;  %v3667_v54 = vld [vmem:[%s4628_s1 + $0x430] sm:$0xff]  }
  0x73   :  { %v3668_v55 = vld [vmem:[%s4628_s1 + $0x4b0] sm:$0xff]  }
  0x74   :  { %3315 = vmatpush3.bf16.msra.mxu0 %v3623_v56  ;;  %v3669_v56 = vld [vmem:[%s4628_s1 + $0x478] sm:$0xff]  }
  0x75   :  { %3337 = vmatpush3.bf16.msra.mxu1 %v3624_v57  ;;  %3316 = vmatprep.subr.bf16.mxu0 %v3625_v58  ;;  %v3670_v57 = vld [vmem:[%s4628_s1 + $0x4f8] sm:$0xff]  }
  0x76   :  { %3338 = vmatprep.subr.bf16.mxu1 %v3626_v59  ;;  %v3671_v58 = vld [vmem:[%s4628_s1 + $0x438] sm:$0xff]  }
  0x77   :  { %v3672_v59 = vld [vmem:[%s4628_s1 + $0x4b8] sm:$0xff]  }
  0x78   :  { %3317 = vmatpush3.bf16.msra.mxu0 %v3627_v60  ;;  %v3673_v60 = vld [vmem:[%s4627_s0 + $0x10] ss:$24 sps:$4 sm:$0xff]  }
  0x79   :  { %3339 = vmatpush3.bf16.msra.mxu1 %v3628_v61  ;;  %3318 = vmatprep.subr.bf16.mxu0 %v3629_v62  ;;  %v3675_v61 = vld [vmem:[%s4627_s0 + $0x40] ss:$24 sps:$4 sm:$0xff]   ;;  %v3677_v62 = vld [vmem:[%s4627_s0 + $0x70] ss:$24 sps:$4 sm:$0xff]  }
  0x7a   :  { %3340 = vmatprep.subr.bf16.mxu1 %v3630_v63  ;;  %v3679_v63 = vld [vmem:[%s4627_s0 + $0xa0] ss:$24 sps:$4 sm:$0xff]  }
  0x7b   :  { %v795_v4 = vrot.slane %v3679_v63, %v3934_v45 }
  0x7c   :  { %3319 = vmatpush3.bf16.msra.mxu0 %v3631_v0  ;;  %v753_v0 = vrot.slane %v3673_v60, %v3934_v45 }
  0x7d   :  { %3341 = vmatpush3.bf16.msra.mxu1 %v3632_v1  ;;  %3320 = vmatprep.subr.bf16.mxu0 %v3633_v2  ;;  %v767_v1 = vrot.slane %v3675_v61, %v3934_v45  ;;  %v3681_v2 = vld [vmem:[%s4628_s1 + $0x540] sm:$0xff]  }
  0x7e   :  { %3342 = vmatprep.subr.bf16.mxu1 %v3634_v3  ;;  %v781_v3 = vrot.slane %v3677_v62, %v3934_v45 }
  0x7f   :  { %v804_v6 = vcombine.high %v753_v0, %v767_v1  ;;  %v803_v7 = vcombine.low %v753_v0, %v767_v1 }
  0x80   :  { %3321 = vmatpush3.bf16.msra.mxu0 %v3635_v10  ;;  %v808_v8 = vcombine.high %v781_v3, %v795_v4  ;;  %v807_v9 = vcombine.low %v781_v3, %v795_v4 }
  0x81   :  { %3343 = vmatpush3.bf16.msra.mxu1 %v3636_v13  ;;  %3350 = vmatprep.subr.bf16.mxu0 %v3641_v18  ;;  %v831_v10 = vrot.slane %v804_v6, %v3934_v45  ;;  %v817_v11 = vrot.slane %v803_v7, %v3934_v45 }
  0x82   :  { %3372 = vmatprep.subr.bf16.mxu1 %v3642_v21  ;;  %v859_v12 = vrot.slane %v808_v8, %v3934_v45  ;;  %v845_v13 = vrot.slane %v807_v9, %v3934_v45  ;;  %v3686_v21 = vld [vmem:[%s4628_s1 + $0x5c8] sm:$0xff]  }
  0x83   :  { %2330 = vmatmul.mubr.bf16.vlgmr.msra.gmra.mrb[12].mxu0 %v733_v28  ;;  %v3693_v28 = vld [vmem:[%s4628_s1 + $0x558] sm:$0xff]  }
  0x84   :  { %2371 = vmatmul.mubr.bf16.vlgmr.msra.gmra.mrb[12].mxu1 %v734_v29  ;;  %3351 = vmatpush3.bf16.msra.mxu0 %v3643_v24  ;;  %v871_v16 = vcombine.low %v831_v10, %v859_v12  ;;  %v872_v17 = vcombine.high %v831_v10, %v859_v12  ;;  %v867_v18 = vcombine.low %v817_v11, %v845_v13  ;;  %v3689_v24 = vld [vmem:[%s4628_s1 + $0x550] sm:$0xff]   ;;  %v3694_v29 = vld [vmem:[%s4628_s1 + $0x5d8] sm:$0xff]  }
  0x85   :  { %3373 = vmatpush3.bf16.msra.mxu1 %v3644_v25  ;;  %3352 = vmatprep.subr.bf16.mxu0 %v3645_v30  ;;  %v868_v19 = vcombine.high %v817_v11, %v845_v13  ;;  %v3690_v25 = vld [vmem:[%s4628_s1 + $0x5d0] sm:$0xff]   ;;  %v3695_v30 = vld [vmem:[%s4628_s1 + $0x518] sm:$0xff]  }
  0x86   :  { %3374 = vmatprep.subr.bf16.mxu1 %v3646_v31  ;;  %2411 = vmatprep.mubr.bf16.mxu0 %v871_v16  ;;  %v3696_v31 = vld [vmem:[%s4628_s1 + $0x598] sm:$0xff]  }
  0x87   :  { %2452 = vmatprep.mubr.bf16.mxu1 %v872_v17 }
  0x88   :  { %3353 = vmatpush3.bf16.msra.mxu0 %v3647_v32  ;;  %v3697_v32 = vld [vmem:[%s4628_s1 + $0x560] sm:$0xff]  }
  0x89   :  { %3375 = vmatpush3.bf16.msra.mxu1 %v3648_v33  ;;  %3354 = vmatprep.subr.bf16.mxu0 %v3649_v34  ;;  %v3698_v33 = vld [vmem:[%s4628_s1 + $0x5e0] sm:$0xff]  }
  0x8a   :  { %3376 = vmatprep.subr.bf16.mxu1 %v3650_v36  ;;  %v3699_v34 = vld [vmem:[%s4628_s1 + $0x520] sm:$0xff]  }
  0x8b   :  { %v3700_v36 = vld [vmem:[%s4628_s1 + $0x5a0] sm:$0xff]  }
  0x8c   :  { %3355 = vmatpush3.bf16.msra.mxu0 %v3651_v37  ;;  %v3701_v37 = vld [vmem:[%s4628_s1 + $0x568] sm:$0xff]  }
  0x8d   :  { %3377 = vmatpush3.bf16.msra.mxu1 %v3652_v38  ;;  %3356 = vmatprep.subr.bf16.mxu0 %v3653_v39  ;;  %v3702_v38 = vld [vmem:[%s4628_s1 + $0x5e8] sm:$0xff]  }
  0x8e   :  { %3378 = vmatprep.subr.bf16.mxu1 %v3654_v40  ;;  %v3703_v39 = vld [vmem:[%s4628_s1 + $0x528] sm:$0xff]  }
  0x8f   :  { %v3704_v40 = vld [vmem:[%s4628_s1 + $0x5a8] sm:$0xff]  }
  0x90   :  { %3357 = vmatpush3.bf16.msra.mxu0 %v3655_v41  ;;  %v3705_v41 = vld [vmem:[%s4628_s1 + $0x570] sm:$0xff]  }
  0x91   :  { %3379 = vmatpush3.bf16.msra.mxu1 %v3656_v42  ;;  %3358 = vmatprep.subr.bf16.mxu0 %v3657_v43  ;;  %v3706_v42 = vld [vmem:[%s4628_s1 + $0x5f0] sm:$0xff]  }
  0x92   :  { %3380 = vmatprep.subr.bf16.mxu1 %v3658_v44  ;;  %v3707_v43 = vld [vmem:[%s4628_s1 + $0x530] sm:$0xff]  }
  0x93   :  { %v3708_v44 = vld [vmem:[%s4628_s1 + $0x5b0] sm:$0xff]  }
  0x94   :  { %3359 = vmatpush3.bf16.msra.mxu0 %v3659_v46  ;;  %v3709_v46 = vld [vmem:[%s4628_s1 + $0x578] sm:$0xff]  }
  0x95   :  { %3381 = vmatpush3.bf16.msra.mxu1 %v3660_v47  ;;  %3360 = vmatprep.subr.bf16.mxu0 %v3661_v48  ;;  %v3710_v47 = vld [vmem:[%s4628_s1 + $0x5f8] sm:$0xff]   ;;  %v3713_v48 = vld [vmem:[%s4627_s0 + $0x14] ss:$24 sps:$4 sm:$0xff]  }
  0x96   :  { %3382 = vmatprep.subr.bf16.mxu1 %v3662_v49  ;;  %v3714_v49 = vld [vmem:[%s4627_s0 + $0x44] ss:$24 sps:$4 sm:$0xff]  }
  0x98   :  { %3361 = vmatpush3.bf16.msra.mxu0 %v3663_v50  ;;  %v3715_v50 = vld [vmem:[%s4627_s0 + $0x74] ss:$24 sps:$4 sm:$0xff]  }
  0x99   :  { %3383 = vmatpush3.bf16.msra.mxu1 %v3664_v51  ;;  %3362 = vmatprep.subr.bf16.mxu0 %v3665_v52  ;;  %v3716_v51 = vld [vmem:[%s4627_s0 + $0xa4] ss:$24 sps:$4 sm:$0xff]  }
  0x9a   :  { %3384 = vmatprep.subr.bf16.mxu1 %v3666_v53  ;;  %v3711_v52 = vld [vmem:[%s4628_s1 + $0x538] sm:$0xff]  }
  0x9b   :  { %v3712_v53 = vld [vmem:[%s4628_s1 + $0x5b8] sm:$0xff]  }
  0x9c   :  { %3363 = vmatpush3.bf16.msra.mxu0 %v3667_v54  ;;  %v760_v54 = vrot.slane %v3713_v48, %v3934_v45 }
  0x9d   :  { %3385 = vmatpush3.bf16.msra.mxu1 %v3668_v55  ;;  %3364 = vmatprep.subr.bf16.mxu0 %v3669_v56  ;;  %v774_v55 = vrot.slane %v3714_v49, %v3934_v45  ;;  %v788_v56 = vrot.slane %v3715_v50, %v3934_v45 }
  0x9e   :  { %3386 = vmatprep.subr.bf16.mxu1 %v3670_v57  ;;  %v802_v57 = vrot.slane %v3716_v51, %v3934_v45 }
  0x9f   :  { %v805_v60 = vcombine.low %v760_v54, %v774_v55 }
  0xa0   :  { %3365 = vmatpush3.bf16.msra.mxu0 %v3671_v58  ;;  %v806_v58 = vcombine.high %v760_v54, %v774_v55  ;;  %v809_v61 = vcombine.low %v788_v56, %v802_v57 }
  0xa1   :  { %3387 = vmatpush3.bf16.msra.mxu1 %v3672_v59  ;;  %3394 = vmatprep.subr.bf16.mxu0 %v3681_v2  ;;  %v810_v59 = vcombine.high %v788_v56, %v802_v57  ;;  %v824_v0 = vrot.slane %v805_v60, %v3934_v45 }
  0xa2   :  { %3416 = vmatprep.subr.bf16.mxu1 %v3682_v5  ;;  %v838_v62 = vrot.slane %v806_v58, %v3934_v45  ;;  %v852_v1 = vrot.slane %v809_v61, %v3934_v45 }
  0xa3   :  { %2412 = vmatmul.mubr.bf16.vlgmr.msra.gmra.mrb[16].mxu0 %v867_v18  ;;  %v866_v63 = vrot.slane %v810_v59, %v3934_v45 }
  0xa4   :  { %2453 = vmatmul.mubr.bf16.vlgmr.msra.gmra.mrb[16].mxu1 %v868_v19  ;;  %3395 = vmatpush3.bf16.msra.mxu0 %v3683_v14  ;;  %v869_v4 = vcombine.low %v824_v0, %v852_v1  ;;  %v870_v5 = vcombine.high %v824_v0, %v852_v1 }
  0xa5   :  { %3417 = vmatpush3.bf16.msra.mxu1 %v3684_v15  ;;  %3396 = vmatprep.subr.bf16.mxu0 %v3685_v20  ;;  %v873_v2 = vcombine.low %v838_v62, %v866_v63  ;;  %v874_v3 = vcombine.high %v838_v62, %v866_v63 }
  0xa6   :  { %3418 = vmatprep.subr.bf16.mxu1 %v3686_v21 }
  0xa7   :  { %2493 = vmatprep.mubr.bf16.mxu0 %v873_v2  ;;  %2534 = vmatprep.mubr.bf16.mxu1 %v874_v3 }
  0xa8   :  { %3397 = vmatpush3.bf16.msra.mxu0 %v3687_v22 }
  0xa9   :  { %3419 = vmatpush3.bf16.msra.mxu1 %v3688_v23  ;;  %3398 = vmatprep.subr.bf16.mxu0 %v3689_v24 }
  0xaa   :  { %3420 = vmatprep.subr.bf16.mxu1 %v3690_v25 }
  0xac   :  { %3399 = vmatpush3.bf16.msra.mxu0 %v3691_v26 }
  0xad   :  { %3421 = vmatpush3.bf16.msra.mxu1 %v3692_v27  ;;  %3400 = vmatprep.subr.bf16.mxu0 %v3693_v28 }
  0xae   :  { %3422 = vmatprep.subr.bf16.mxu1 %v3694_v29 }
  0xb0   :  { %3401 = vmatpush3.bf16.msra.mxu0 %v3695_v30 }
  0xb1   :  { %3423 = vmatpush3.bf16.msra.mxu1 %v3696_v31  ;;  %3402 = vmatprep.subr.bf16.mxu0 %v3697_v32 }
  0xb2   :  { %3424 = vmatprep.subr.bf16.mxu1 %v3698_v33 }
  0xb4   :  { %3403 = vmatpush3.bf16.msra.mxu0 %v3699_v34 }
  0xb5   :  { %3425 = vmatpush3.bf16.msra.mxu1 %v3700_v36  ;;  %3404 = vmatprep.subr.bf16.mxu0 %v3701_v37 }
  0xb6   :  { %3426 = vmatprep.subr.bf16.mxu1 %v3702_v38 }
  0xb8   :  { %3405 = vmatpush3.bf16.msra.mxu0 %v3703_v39 }
  0xb9   :  { %3427 = vmatpush3.bf16.msra.mxu1 %v3704_v40  ;;  %3406 = vmatprep.subr.bf16.mxu0 %v3705_v41 }
  0xba   :  { %3428 = vmatprep.subr.bf16.mxu1 %v3706_v42 }
  0xbc   :  { %3407 = vmatpush3.bf16.msra.mxu0 %v3707_v43 }
  0xbd   :  { %3429 = vmatpush3.bf16.msra.mxu1 %v3708_v44  ;;  %3408 = vmatprep.subr.bf16.mxu0 %v3709_v46 }
  0xbe   :  { %3430 = vmatprep.subr.bf16.mxu1 %v3710_v47 }
  0xc0   :  { %3409 = vmatpush3.bf16.msra.mxu0 %v3711_v52 }
  0xc1   :  { %3431 = vmatpush3.bf16.msra.mxu1 %v3712_v53 }
  0xc3   :  { %2494 = vmatmul.mubr.bf16.vlgmr.msra.gmra.mrb[20].mxu0 %v869_v4 }
  0xc4   :  { %2535 = vmatmul.mubr.bf16.vlgmr.msra.gmra.mrb[20].mxu1 %v870_v5 }
  0xc5   :  { %12 = vsyncpa [#allocation3], 0  ;;  %v2954_v8 = vld [vmem:[%s4629_s2] ss:$0 sm:$0xff]  ;;  %vm2584_vm0 = vcmask 1044480   ;;  %v3765_v42 = vmov 0  }
  0xc6   :  { %v3717_v39 = vld [vmem:[%s4630_s3 + $0x4] ss:$12 sps:$4 sm:$0x1f]   ;;  %v3719_v40 = vld [vmem:[%s4630_s3] ss:$12 sps:$4 sm:$0x1f]   ;;  %2626 = vmatprep.mubr.bf16.mxu1 %v3765_v42 }
  0xc7   :  { %3150 = vmatprep.subr.msk.bf16.mxu1 %vm2584_vm0, %v3717_v39  ;;  %v2586_v41 = vsel %vm2584_vm0, %v3719_v40, 0  ;;  %v3766_v43 = vmov 0.0   ;;  %v3721_v44 = vld [vmem:[%s4632_s5 + $0x40] sm:$0xff]   ;;  %v3723_v47 = vld [vmem:[%s4632_s5 + $0x48] sm:$0xff]   ;;  %v3725_v51 = vld [vmem:[%s4632_s5 + $0x50] sm:$0xff]   ;;  %vm2580_vm1 = vcmask 80896  }
  0xc8   :  { %2595 = vmatpush1.bf16.msra.mxu1 %v2586_v41  ;;  %v3722_v46 = vld [vmem:[%s4632_s5] sm:$0xff]   ;;  %3440 = vmatprep.subr.bf16.mxu0 %v3721_v44  ;;  %v3724_v48 = vld [vmem:[%s4632_s5 + $0x8] sm:$0xff]   ;;  %v3726_v60 = vld [vmem:[%s4632_s5 + $0x10] sm:$0xff]   ;;  %vm3767_vm2 = vmmov 0   ;;  %vm2849_vm3 = vcmask 1045504   ;;  %vm2845_vm4 = vcmask 359424  }
  0xc9   :  { %3466 = vmatprep.subr.bf16.mxu1 %v3766_v43  ;;  %3441 = vmatpush3.bf16.msra.mxu0 %v3722_v46  ;;  %v3727_v0 = vld [vmem:[%s4632_s5 + $0x58] sm:$0xff]   ;;  %v3729_v5 = vld [vmem:[%s4632_s5 + $0x60] sm:$0xff]   ;;  %s3768_s14 = smov [#allocation2]   ;;  %vm2935_vm5 = vcmask 818176  }
  0xca   :  { %3442 = vmatprep.subr.bf16.mxu0 %v3723_v47  ;;  %v3728_v3 = vld [vmem:[%s4632_s5 + $0x18] sm:$0xff]   ;;  %s2943_s15 = sshll.u32 %s3768_s14, 4  ;;  %s2944_s15 = int_to_ptr.vmem [resolvable:$true] %s2943_s15 }
  0xcb   :  { %s3740_s16 = scalar_lea.vmem %s2944_s15, 256  ;;  %p3745_p1 = scmp.lt.s32.totalorder %s2944_s15, %s2944_s15 }
  0xcc   :  { %p3741_p0 = scmp.ne.s32.totalorder %s2944_s15, %s3740_s16  ;;  %p3746_p2 = scmp.lt.s32.totalorder %s3740_s16, %s3740_s16 }
  0xcd   :  { %3443 = vmatpush3.bf16.msra.mxu0 %v3724_v48 }
  0xce   :  { %3444 = vmatprep.subr.bf16.mxu0 %v3725_v51  ;;  %p3747_p3 = por %p3746_p2, %p3745_p1 }
  0xd0   :  { %p3748_p4 = pnand %p3747_p3, %p3741_p0 }
  0xd1   :  { %3445 = vmatpush3.bf16.msra.mxu0 %v3726_v60 }
  0xd2   :  { %3446 = vmatprep.subr.bf16.mxu0 %v3727_v0  ;;  %v3733_v0 = vld [vmem:[%s4632_s5 + $0x70] sm:$0xff]  }
  0xd5   :  { %3447 = vmatpush3.bf16.msra.mxu0 %v3728_v3  ;;  %v3736_v3 = vld [vmem:[%s4632_s5 + $0x78] sm:$0xff]  }
  0xd6   :  { %3448 = vmatprep.subr.bf16.mxu0 %v3729_v5  ;;  %v3738_v5 = vld [vmem:[%s4632_s5 + $0x88] sm:$0xff]  }
  0xf6   :  { %v3190_v6 = vpop.f32.mrb[0].mxu0 }
  0xf7   :  { %v3212_v7 = vpop.f32.mrb[0].mxu1  ;;  %v3191_v9 = vpop.f32.mrb[1].mxu0 }
  0xf8   :  { %v3213_v10 = vpop.f32.mrb[1].mxu1  ;;  %v3192_v11 = vadd.f32 %v3191_v9, %v3190_v6  ;;  %v3193_v45 = vpop.f32.mrb[2].mxu0  ;;  %v3730_v6 = vld [vmem:[%s4632_s5 + $0x20] sm:$0xff]  }
  0xf9   :  { %v3214_v12 = vadd.f32 %v3213_v10, %v3212_v7  ;;  %v3215_v13 = vpop.f32.mrb[2].mxu1  ;;  %v3194_v14 = vpop.f32.mrb[3].mxu0  ;;  %v3731_v7 = vld [vmem:[%s4632_s5 + $0x68] sm:$0xff]   ;;  %3449 = vmatpush3.bf16.msra.mxu0 %v3730_v6  ;;  %v3739_v6 = vld [vmem:[%s4632_s5 + $0x90] sm:$0x3f]  }
  0xfa   :  { %v3216_v15 = vpop.f32.mrb[3].mxu1  ;;  %v2086_v16 = vadd.f32 %v3192_v11, %v2954_v8  ;;  %v3195_v17 = vadd.f32 %v3194_v14, %v3193_v45  ;;  %3450 = vmatprep.subr.bf16.mxu0 %v3731_v7  ;;  %v2851_v7 = vsel %vm2849_vm3, %v3739_v6, 0 }
  0xfb   :  { %v3217_v18 = vadd.f32 %v3216_v15, %v3215_v13 }
  0xfc   :  { %v2127_v19 = vadd.f32 %v3214_v12, %v2086_v16  ;;  %v2089_v20 = vadd.f32 %v3195_v17, %v2954_v8 }
  0xfe   :  { %v2130_v21 = vadd.f32 %v3217_v18, %v2089_v20 }
 0x116   :  { %v3234_v22 = vpop.f32.mrb[4].mxu0 }
 0x117   :  { %v3256_v23 = vpop.f32.mrb[4].mxu1  ;;  %v3235_v24 = vpop.f32.mrb[5].mxu0 }
 0x118   :  { %v3257_v25 = vpop.f32.mrb[5].mxu1  ;;  %v3236_v26 = vadd.f32 %v3235_v24, %v3234_v22  ;;  %v3237_v28 = vpop.f32.mrb[6].mxu0 }
 0x119   :  { %v3258_v27 = vadd.f32 %v3257_v25, %v3256_v23  ;;  %v3259_v29 = vpop.f32.mrb[6].mxu1  ;;  %v3238_v30 = vpop.f32.mrb[7].mxu0 }
 0x11a   :  { %v3260_v31 = vpop.f32.mrb[7].mxu1  ;;  %v2168_v32 = vadd.f32 %v3236_v26, %v2127_v19  ;;  %v3239_v33 = vadd.f32 %v3238_v30, %v3237_v28 }
 0x11b   :  { %v3261_v34 = vadd.f32 %v3260_v31, %v3259_v29 }
 0x11c   :  { %v2209_v36 = vadd.f32 %v3258_v27, %v2168_v32  ;;  %v2171_v37 = vadd.f32 %v3239_v33, %v2130_v21 }
 0x11e   :  { %v2212_v38 = vadd.f32 %v3261_v34, %v2171_v37 }
 0x136   :  { %v3278_v49 = vpop.f32.mrb[8].mxu0 }
 0x137   :  { %v3300_v50 = vpop.f32.mrb[8].mxu1  ;;  %v3279_v52 = vpop.f32.mrb[9].mxu0 }
 0x138   :  { %v3301_v53 = vpop.f32.mrb[9].mxu1  ;;  %v3280_v54 = vadd.f32 %v3279_v52, %v3278_v49  ;;  %v3281_v56 = vpop.f32.mrb[10].mxu0 }
 0x139   :  { %v3302_v55 = vadd.f32 %v3301_v53, %v3300_v50  ;;  %v3303_v57 = vpop.f32.mrb[10].mxu1  ;;  %v3282_v58 = vpop.f32.mrb[11].mxu0 }
 0x13a   :  { %v3304_v59 = vpop.f32.mrb[11].mxu1  ;;  %v2250_v61 = vadd.f32 %v3280_v54, %v2209_v36  ;;  %v3283_v62 = vadd.f32 %v3282_v58, %v3281_v56  ;;  %v3720_v58 = vld [vmem:[%s4630_s3 + $0x8] ss:$12 sps:$4 sm:$0x1f]  }
 0x13b   :  { %v3305_v63 = vadd.f32 %v3304_v59, %v3303_v57 }
 0x13c   :  { %v2291_v1 = vadd.f32 %v3302_v55, %v2250_v61  ;;  %v2253_v2 = vadd.f32 %v3283_v62, %v2212_v38  ;;  %v2592_v62 = vsel %vm2584_vm0, %v3720_v58, 0 }
 0x13e   :  { %v2294_v4 = vadd.f32 %v3305_v63, %v2253_v2  ;;  %v3732_v63 = vld [vmem:[%s4632_s5 + $0x28] sm:$0xff]   ;;  %v3735_v2 = vld [vmem:[%s4632_s5 + $0x80] sm:$0xff]  }
 0x13f   :  { %3451 = vmatpush3.bf16.msra.mxu0 %v3732_v63 }
 0x140   :  { %3452 = vmatprep.subr.bf16.mxu0 %v3733_v0 }
 0x156   :  { %v3322_v8 = vpop.f32.mrb[12].mxu0 }
 0x157   :  { %v3344_v9 = vpop.f32.mrb[12].mxu1  ;;  %v3323_v10 = vpop.f32.mrb[13].mxu0 }
 0x158   :  { %v3345_v11 = vpop.f32.mrb[13].mxu1  ;;  %v3324_v12 = vadd.f32 %v3323_v10, %v3322_v8  ;;  %v3325_v13 = vpop.f32.mrb[14].mxu0  ;;  %v2554_v8 = vsub.s32 0, %v3907_v35  ;;  %v2558_v10 = vsub.s32 1, %v3907_v35 }
 0x159   :  { %v3346_v45 = vadd.f32 %v3345_v11, %v3344_v9  ;;  %v3347_v14 = vpop.f32.mrb[14].mxu1  ;;  %v3326_v15 = vpop.f32.mrb[15].mxu0  ;;  %v2550_v9 = vld [vmem:[%s4631_s4] sm:$0x7] }
 0x15a   :  { %v3348_v16 = vpop.f32.mrb[15].mxu1  ;;  %v2332_v17 = vadd.f32 %v3324_v12, %v2291_v1  ;;  %v3327_v18 = vadd.f32 %v3326_v15, %v3325_v13  ;;  %v3734_v1 = vld [vmem:[%s4632_s5 + $0x30] sm:$0xff]   ;;  %v2555_v11 = vrot.slane %v2550_v9, %v2554_v8  ;;  %v2559_v12 = vrot.slane %v2550_v9, %v2558_v10 }
 0x15b   :  { %v3349_v19 = vadd.f32 %v3348_v16, %v3347_v14  ;;  %3453 = vmatpush3.bf16.msra.mxu0 %v3734_v1  ;;  %v2562_v14 = vsub.s32 2, %v3907_v35 }
 0x15c   :  { %v2373_v20 = vadd.f32 %v3346_v45, %v2332_v17  ;;  %v2335_v21 = vadd.f32 %v3327_v18, %v2294_v4  ;;  %v3737_v4 = vld [vmem:[%s4632_s5 + $0x38] sm:$0xff]   ;;  %3454 = vmatprep.subr.bf16.mxu0 %v3736_v3 }
 0x15e   :  { %v2376_v22 = vadd.f32 %v3349_v19, %v2335_v21 }
 0x15f   :  { %3455 = vmatpush3.bf16.msra.mxu0 %v3737_v4 }
 0x176   :  { %v3366_v23 = vpop.f32.mrb[16].mxu0 }
 0x177   :  { %v3388_v24 = vpop.f32.mrb[16].mxu1  ;;  %v3367_v25 = vpop.f32.mrb[17].mxu0 }
 0x178   :  { %v3389_v26 = vpop.f32.mrb[17].mxu1  ;;  %v3368_v27 = vadd.f32 %v3367_v25, %v3366_v23  ;;  %v3369_v29 = vpop.f32.mrb[18].mxu0 }
 0x179   :  { %v3390_v28 = vadd.f32 %v3389_v26, %v3388_v24  ;;  %v3391_v30 = vpop.f32.mrb[18].mxu1  ;;  %v3370_v31 = vpop.f32.mrb[19].mxu0 }
 0x17a   :  { %v3392_v32 = vpop.f32.mrb[19].mxu1  ;;  %v2414_v33 = vadd.f32 %v3368_v27, %v2373_v20  ;;  %v3371_v34 = vadd.f32 %v3370_v31, %v3369_v29 }
 0x17b   :  { %v3393_v36 = vadd.f32 %v3392_v32, %v3391_v30 }
 0x17c   :  { %v2455_v37 = vadd.f32 %v3390_v28, %v2414_v33  ;;  %v2417_v38 = vadd.f32 %v3371_v34, %v2376_v22  ;;  %v2563_v22 = vrot.slane %v2550_v9, %v2562_v14 }
 0x17e   :  { %v2458_v39 = vadd.f32 %v3393_v36, %v2417_v38  ;;  %v3153_v38 = vld [vmem:[%s4633_s6] ss:$0 sm:$0xff] }
 0x196   :  { %v3410_v40 = vpop.f32.mrb[20].mxu0 }
 0x197   :  { %v3432_v41 = vpop.f32.mrb[20].mxu1  ;;  %v3411_v42 = vpop.f32.mrb[21].mxu0 }
 0x198   :  { %v3433_v44 = vpop.f32.mrb[21].mxu1  ;;  %v3412_v46 = vadd.f32 %v3411_v42, %v3410_v40  ;;  %v3413_v48 = vpop.f32.mrb[22].mxu0 }
 0x199   :  { %v3434_v47 = vadd.f32 %v3433_v44, %v3432_v41  ;;  %v3435_v49 = vpop.f32.mrb[22].mxu1  ;;  %v3414_v50 = vpop.f32.mrb[23].mxu0 }
 0x19a   :  { %v3436_v51 = vpop.f32.mrb[23].mxu1  ;;  %v2496_v52 = vadd.f32 %v3412_v46, %v2455_v37  ;;  %v3415_v53 = vadd.f32 %v3414_v50, %v3413_v48 }
 0x19b   :  { %v3437_v54 = vadd.f32 %v3436_v51, %v3435_v49 }
 0x19c   :  { %v2537_v55 = vadd.f32 %v3434_v47, %v2496_v52  ;;  %v2499_v56 = vadd.f32 %v3415_v53, %v2458_v39 }
 0x19e   :  { %v2540_v57 = vadd.f32 %v3437_v54, %v2499_v56  ;;  %v2543_v59 = vmax.f32 %v2537_v55, 0.0 }
 0x1a0   :  { %v2544_v60 = vmax.f32 %v2540_v57, 0.0 }
 0x1a2   :  { %v2545_v61 = vpack.c.bf16 %v2544_v60, %v2543_v59 }
 0x1a4   :  { %3151 = vmatmul.mubr.msk.bf16.vlgmr.msra.gmra.mrb[24].mxu1 %vm2580_vm1, %v2545_v61 }
 0x1a5   :  { %3467 = vmatpush3.bf16.msra.mxu1 %v2592_v62  ;;  %3468 = vmatprep.mubr.msk.bf16.mxu1 %vm3767_vm2, %v3766_v43 }
 0x1a6   :  { %3472 = vmatprep.subr.bf16.mxu1 %v3766_v43 }
 0x1ac   :  { %3469 = vmatmul.mubr.msk.bf16.vlgmr.msra.gmra.mrb[28].mxu1 %vm2580_vm1, %v2545_v61 }
 0x1ad   :  { %3478 = vmatprep.mubr.msk.bf16.mxu1 %vm3767_vm2, %v3766_v43  ;;  %3473 = vmatpush3.bf16.msra.mxu1 %v3735_v2 }
 0x1ae   :  { %3474 = vmatprep.subr.bf16.mxu1 %v3766_v43 }
 0x1b1   :  { %3475 = vmatpush3.bf16.msra.mxu1 %v3738_v5 }
 0x1b2   :  { %3476 = vmatprep.subr.bf16.mxu1 %v3766_v43 }
 0x1b5   :  { %3477 = vmatpush3.bf16.msra.mxu1 %v2851_v7 }
 0x277   :  { %v2628_v45 = vpop.f32.mrb[24].mxu1 }
 0x278   :  { %v2629_v13 = vadd.f32 %v2628_v45, %v2555_v11  ;;  %v2630_v43 = vpop.f32.mrb[25].mxu1 }
 0x279   :  { %v2631_v15 = vadd.f32 %v2630_v43, %v2559_v12  ;;  %v2632_v16 = vpop.f32.mrb[26].mxu1 }
 0x27a   :  { %v2633_v17 = vadd.f32 %v2632_v16, %v2555_v11  ;;  %v2634_v18 = vpop.f32.mrb[27].mxu1  ;;  %v2678_v20 = vmax.f32 %v2629_v13, 0.0 }
 0x27b   :  { %v2635_v19 = vadd.f32 %v2634_v18, %v2559_v12  ;;  %v2679_v23 = vmax.f32 %v2631_v15, 0.0 }
 0x27c   :  { %v2681_v21 = vmax.f32 %v2633_v17, 0.0 }
 0x27d   :  { %v2682_v24 = vmax.f32 %v2635_v19, 0.0 }
 0x27e   :  { %v2684_v25 = vpack.c.bf16 %v2681_v21, %v2678_v20 }
 0x27f   :  { %v2685_v26 = vpack.c.bf16 %v2682_v24, %v2679_v23  ;;  %v2671_v27 = vpop.f32.mrb[28].mxu1 }
 0x280   :  { %v2672_v28 = vadd.f32 %v2671_v27, %v2563_v22  ;;  %v3470_v29 = vpop.f32.mrb[29].mxu1 }
 0x281   :  { %v2674_v30 = vpop.f32.mrb[30].mxu1  ;;  %2885 = vmatprep.mubr.bf16.mxu0 %v2685_v26 }
 0x282   :  { %v2675_v31 = vadd.f32 %v2674_v30, %v2563_v22  ;;  %v3471_v32 = vpop.f32.mrb[31].mxu1  ;;  %2886 = vmatmul.mubr.bf16.vlgmr.msra.gmra.mrb[24].mxu0 %v2684_v25  ;;  %v2680_v35 = vmax.f32 %v2672_v28, 0.0 }
 0x284   :  { %v2683_v33 = vmax.f32 %v2675_v31, 0.0 }
 0x286   :  { %v2686_v34 = vpack.c.bf16 %v2683_v33, %v2680_v35 }
 0x288   :  { %3479 = vmatmul.mubr.msk.bf16.vlgmr.msra.gmra.mrb[32].mxu1 %vm2845_vm4, %v2686_v34 }
 0x355   :  { %v3456_v36 = vpop.f32.mrb[24].mxu0 }
 0x356   :  { %v3457_v37 = vpop.f32.mrb[25].mxu0 }
 0x357   :  { %v3458_v39 = vadd.f32 %v3457_v37, %v3456_v36  ;;  %v3459_v40 = vpop.f32.mrb[26].mxu0 }
 0x358   :  { %v3460_v41 = vpop.f32.mrb[27].mxu0 }
 0x359   :  { %v3461_v42 = vadd.f32 %v3460_v41, %v3459_v40  ;;  %v2888_v44 = vadd.f32 %v3458_v39, %v3153_v38 }
 0x35b   :  { %v2928_v46 = vpop.f32.mrb[32].mxu1  ;;  %v2891_v47 = vadd.f32 %v3461_v42, %v3153_v38 }
 0x35c   :  { %v2929_v48 = vadd.f32 %v2928_v46, %v2888_v44  ;;  %v3480_v49 = vpop.f32.mrb[33].mxu1 }
 0x35d   :  { %v2931_v50 = vpop.f32.mrb[34].mxu1 }
 0x35e   :  { %2936 = vst.msk [vmem:[#allocation2] sm:$0xff] %vm2935_vm5, %v2929_v48  ;;  %v2932_v51 = vadd.f32 %v2931_v50, %v2891_v47  ;;  %v3481_v52 = vpop.f32.mrb[35].mxu1 }
 0x360   :  { %2937 = vst.msk [vmem:[#allocation2 + $0x8] sm:$0xff] %vm2935_vm5, %v2932_v51 }
 0x361   :  { %3751 = shalt.err (!%p3748_p4)
}
 0x362   :  { %s3752_s18 = scalar_lea.hbm %s4634_s7, 256 }
 0x363   :  { %p3753_p5 = scmp.ne.s32.totalorder %s4634_s7, %s3752_s18  ;;  %p3756_p6 = scmp.lt.u32.totalorder %s3752_s18, %s4634_s7 }
 0x365   :  { %p3758_p7 = pnand %p3756_p6, %p3753_p5 }
 0x367   :  { %3761 = shalt.err (!%p3758_p7)
}
 0x368   :  { %s3769_s20 = smov 128   ;;  %s3770_s21 = smov 8  }
 0x369   :  { %2949 = dma.vmem_to_hbm [thread:$0]  %s2944_s15, 256, %s4634_s7, [#allocation3], %s3769_s20, %s3769_s20, %s3770_s21  }
 0x36a   :  { %3762 = dma.done.wait [#allocation3], 256  }
 0x36b   :  { %3763 = vsyncadd [#allocation3], 4294967040 }
 0x36c   :  { %2953 = vsyncpa [#allocation3], 1 }

</bundles_post_ra>
